<compile_context>
chip_gen: v6e
topology: v6e:2x2x1
jax: 0.10.0
libtpu: 0.0.40
codegen_flags: <defaults>
</compile_context>

<pallas_src>
import math

import jax
import jax.numpy as jnp
from jax.experimental import pallas as pl
from jax.experimental.pallas import tpu as pltpu


def _round_up(x, m):
    return ((x + m - 1) // m) * m


def _combined_bias(b_hh, b_ih):
    """b_hh + b_ih as one f32 vector, or None if both absent."""
    bias = None
    if b_hh is not None:
        bias = b_hh.astype(jnp.float32)
    if b_ih is not None:
        bias = b_ih.astype(jnp.float32) if bias is None else bias + b_ih.astype(jnp.float32)
    return bias


# --------------------------------------------------------------- single step
def _step_kernel_bias(x_ref, h_ref, wih_ref, whh_ref, b_ref, o_ref):
    # Two bf16 MXU dots, f32 accumulate, f32 bias + tanh epilogue.
    acc = jnp.dot(x_ref[...], wih_ref[...], preferred_element_type=jnp.float32)
    acc = acc + jnp.dot(h_ref[...], whh_ref[...], preferred_element_type=jnp.float32)
    o_ref[...] = jnp.tanh(acc + b_ref[...])


def _step_kernel_nobias(x_ref, h_ref, wih_ref, whh_ref, o_ref):
    acc = jnp.dot(x_ref[...], wih_ref[...], preferred_element_type=jnp.float32)
    acc = acc + jnp.dot(h_ref[...], whh_ref[...], preferred_element_type=jnp.float32)
    o_ref[...] = jnp.tanh(acc)


def rec_cell_forward(x, h, w_ih, w_hh, b_hh=None, b_ih=None):
    """Single Rec_cell step (matches Rec_cell.forward / rec_lin_func)."""
    B, input_size = x.shape
    hidden_size = w_ih.shape[0]
    assert h.shape == (B, hidden_size)
    assert w_hh.shape == (hidden_size, hidden_size)

    Bp = _round_up(B, 8)
    Ip = _round_up(input_size, 128)
    Hp = _round_up(hidden_size, 128)

    # Activations padded to lane-dense shapes and pre-cast to bf16 (halved DMA);
    # no XLA-side concatenation of [x | h] (x and h are separate operands).
    x_p = jnp.pad(x, ((0, Bp - B), (0, Ip - input_size))).astype(jnp.bfloat16)
    h_p = jnp.pad(h, ((0, Bp - B), (0, Hp - hidden_size))).astype(jnp.bfloat16)
    wih_p = jnp.pad(w_ih.T, ((0, Ip - input_size), (0, Hp - hidden_size))).astype(jnp.bfloat16)
    whh_p = jnp.pad(w_hh, ((0, Hp - hidden_size), (0, Hp - hidden_size))).astype(jnp.bfloat16)
    bias = _combined_bias(b_hh, b_ih)

    full = lambda shape: pl.BlockSpec(shape, lambda: (0,) * len(shape))
    if bias is not None:
        bias_p = jnp.pad(bias.reshape(1, hidden_size), ((0, 0), (0, Hp - hidden_size)))
        kernel = _step_kernel_bias
        in_specs = [full((Bp, Ip)), full((Bp, Hp)), full((Ip, Hp)), full((Hp, Hp)),
                    full((1, Hp))]
        args = (x_p, h_p, wih_p, whh_p, bias_p)
    else:
        kernel = _step_kernel_nobias
        in_specs = [full((Bp, Ip)), full((Bp, Hp)), full((Ip, Hp)), full((Hp, Hp))]
        args = (x_p, h_p, wih_p, whh_p)

    out = pl.pallas_call(
        kernel,
        out_shape=jax.ShapeDtypeStruct((Bp, Hp), jnp.float32),
        grid_spec=pltpu.PrefetchScalarGridSpec(
            num_scalar_prefetch=0,
            grid=(),
            in_specs=in_specs,
            out_specs=full((Bp, Hp)),
        ),
    )(*args)
    return out[:B, :hidden_size]


# ------------------------------------------------------------- full sequence
def _make_seq_kernel(chunk):
    def kernel(p_ref, h0_ref, w_ref, o_ref, h_ref):
        # h_ref: f32 hidden carry in VMEM scratch (persists across grid steps).
        @pl.when(pl.program_id(1) == 0)
        def _():
            h_ref[...] = h0_ref[...]

        # `chunk` timesteps fully unrolled inside one grid step (static indices
        # -> zero-cost slices, amortizes per-grid-step overhead ~chunk x).
        for i in range(chunk):
            acc = jnp.dot(h_ref[...].astype(jnp.bfloat16), w_ref[...],
                          preferred_element_type=jnp.float32)
            h_new = jnp.tanh(p_ref[i] + acc)   # bias already folded into P
            o_ref[i] = h_new
            h_ref[...] = h_new
    return kernel


def rec_cell_sequence(xs, h0, w_ih, w_hh, b_hh=None, b_ih=None, *,
                      time_chunk=8, batch_block=None):
    """Applies the Rec_cell over xs[T, B, I].

    Input projection (+ bias) is hoisted out of the recurrence as one parallel
    GEMM; the recurrent kernel only computes tanh(P[t] + h @ w_hh) with w_hh
    VMEM-resident (constant index_map) and the hidden state carried in a VMEM
    scratch ref.  `batch_block` < batch enables a "parallel" batch-block grid
    axis (useful on v7x's 2 TensorCores).
    """
    T, B, input_size = xs.shape
    hidden_size = w_ih.shape[0]
    assert h0.shape == (B, hidden_size)

    # ---- hoisted input projection: one big parallel GEMM, off the serial chain
    P = jnp.einsum('tbi,hi->tbh', xs, w_ih)          # == xs @ w_ih.T
    bias = _combined_bias(b_hh, b_ih)
    if bias is not None:
        P = P + bias                                 # bias folded in once, here

    Bp = _round_up(B, 8)
    Hp = _round_up(hidden_size, 128)
    C = max(1, min(time_chunk, T))
    Tp = _round_up(T, C)
    Bblk = Bp if batch_block is None else _round_up(min(batch_block, Bp), 8)
    if Bp % Bblk != 0:
        Bblk = Bp
    nb = Bp // Bblk
    nt = Tp // C

    # Padded rows/lanes of P and h0 are zero -> padded lanes of the carry stay
    # exactly zero through the whole recurrence (tanh(0 + 0) = 0).
    P_pad = jnp.pad(P, ((0, Tp - T), (0, Bp - B), (0, Hp - hidden_size)))
    h0_p = jnp.pad(h0, ((0, Bp - B), (0, Hp - hidden_size))).astype(jnp.float32)
    W = jnp.pad(w_hh, ((0, Hp - hidden_size), (0, Hp - hidden_size))).astype(jnp.bfloat16)

    out = pl.pallas_call(
        _make_seq_kernel(C),
        out_shape=jax.ShapeDtypeStruct((Tp, Bp, Hp), jnp.float32),
        grid_spec=pltpu.PrefetchScalarGridSpec(
            num_scalar_prefetch=0,
            grid=(nb, nt),
            in_specs=[
                pl.BlockSpec((C, Bblk, Hp), lambda b, t: (t, b, 0)),   # P chunk
                pl.BlockSpec((Bblk, Hp), lambda b, t: (b, 0)),         # h0
                pl.BlockSpec((Hp, Hp), lambda b, t: (0, 0)),           # w_hh (resident)
            ],
            out_specs=pl.BlockSpec((C, Bblk, Hp), lambda b, t: (t, b, 0)),
            scratch_shapes=[pltpu.VMEM((Bblk, Hp), jnp.float32)],      # hidden carry
        ),
        compiler_params=pltpu.CompilerParams(
            # batch blocks are independent (v7x megacore); time is sequential.
            dimension_semantics=("parallel", "arbitrary"),
        ),
    )(P_pad, h0_p, W)
    return out[:T, :B, :hidden_size]


# ------------------------------------------------------------------ test bits
def xavier_uniform(key, shape):
    fan_out, fan_in = shape
    a = math.sqrt(6.0 / (fan_in + fan_out))
    return jax.random.uniform(key, shape, jnp.float32, minval=-a, maxval=a)


def _ref_step_f32(x, h, w_ih, w_hh, b_hh, b_ih):
    out = x @ w_ih.T + h @ w_hh
    if b_hh is not None:
        out = out + b_hh
    if b_ih is not None:
        out = out + b_ih
    return jnp.tanh(out)


def _ref_step_mimic(x, h, w_ih, w_hh, b_hh, b_ih):
    # Mimics the step kernel's bf16-MXU / f32-accumulate numerics.
    acc = jnp.dot(x.astype(jnp.bfloat16), w_ih.T.astype(jnp.bfloat16),
                  preferred_element_type=jnp.float32)
    acc = acc + jnp.dot(h.astype(jnp.bfloat16), w_hh.astype(jnp.bfloat16),
                        preferred_element_type=jnp.float32)
    bias = _combined_bias(b_hh, b_ih)
    if bias is not None:
        acc = acc + bias
    return jnp.tanh(acc)


def _ref_seq_mimic(xs, h0, w_ih, w_hh, b_hh, b_ih):
    # Mimics the sequence kernel: f32 hoisted projection, bf16 h @ w_hh.
    P = jnp.einsum('tbi,hi->tbh', xs, w_ih)
    bias = _combined_bias(b_hh, b_ih)
    if bias is not None:
        P = P + bias
    W = w_hh.astype(jnp.bfloat16)
    h = h0.astype(jnp.float32)
    outs = []
    for t in range(xs.shape[0]):
        acc = jnp.dot(h.astype(jnp.bfloat16), W, preferred_element_type=jnp.float32)
        h = jnp.tanh(P[t] + acc)
        outs.append(h)
    return jnp.stack(outs)


if __name__ == "__main__":
    B, input_size, hidden_size, T = 8, 16, 32, 8

    key = jax.random.PRNGKey(0)
    ks = jax.random.split(key, 7)
    x = jax.random.normal(ks[0], (B, input_size), jnp.float32)
    h = jax.random.normal(ks[1], (B, hidden_size), jnp.float32)
    w_ih = xavier_uniform(ks[2], (hidden_size, input_size))
    w_hh = xavier_uniform(ks[3], (hidden_size, hidden_size))
    b_ih = jax.random.normal(ks[4], (hidden_size,), jnp.float32)
    b_hh = jax.random.normal(ks[5], (hidden_size,), jnp.float32)
    xs = jax.random.normal(ks[6], (T, B, input_size), jnp.float32)

    # --- single step, with bias (module with bias=True) ---------------------
    out = jax.block_until_ready(rec_cell_forward(x, h, w_ih, w_hh, b_hh, b_ih))
    assert out.shape == (B, hidden_size)
    assert jnp.allclose(out, _ref_step_mimic(x, h, w_ih, w_hh, b_hh, b_ih), atol=1e-2)
    assert jnp.allclose(out, _ref_step_f32(x, h, w_ih, w_hh, b_hh, b_ih), atol=5e-2)

    # --- single step, no bias (module default bias=None) --------------------
    out_nb = jax.block_until_ready(rec_cell_forward(x, h, w_ih, w_hh, None, None))
    assert jnp.allclose(out_nb, _ref_step_f32(x, h, w_ih, w_hh, None, None), atol=5e-2)

    # --- full sequence: hoisted projection + chunked recurrent kernel -------
    seq = jax.block_until_ready(rec_cell_sequence(xs, h, w_ih, w_hh, b_hh, b_ih))
    assert seq.shape == (T, B, hidden_size)
    seq_mimic = _ref_seq_mimic(xs, h, w_ih, w_hh, b_hh, b_ih)
    assert jnp.allclose(seq, seq_mimic, atol=1e-2)
    h_f32 = h
    for t in range(T):
        h_f32 = _ref_step_f32(xs[t], h_f32, w_ih, w_hh, b_hh, b_ih)
        assert jnp.allclose(seq[t], h_f32, atol=1e-1)

    # --- sequence, no bias ---------------------------------------------------
    seq_nb = jax.block_until_ready(rec_cell_sequence(xs, h, w_ih, w_hh, None, None))
    assert jnp.allclose(seq_nb, _ref_seq_mimic(xs, h, w_ih, w_hh, None, None), atol=1e-2)

    print("KERNEL_OK")
</pallas_src>

<mosaic_0001>
module attributes {stable_mosaic.version = 11 : i64} {
  func.func @_step_kernel_bias(%arg0: memref<8x128xbf16, #tpu.memory_space<vmem>>, %arg1: memref<8x128xbf16, #tpu.memory_space<vmem>>, %arg2: memref<128x128xbf16, #tpu.memory_space<vmem>>, %arg3: memref<128x128xbf16, #tpu.memory_space<vmem>>, %arg4: memref<1x128xf32, #tpu.memory_space<vmem>>, %arg5: memref<8x128xf32, #tpu.memory_space<vmem>>) attributes {dimension_semantics = [], scalar_prefetch = 0 : i64, scratch_operands = 0 : i64, tpu.core_type = #tpu.core_type<tc>} {
    %c0 = arith.constant 0 : index
    %c0_0 = arith.constant 0 : index
    %0 = vector.load %arg0[%c0, %c0_0] : memref<8x128xbf16, #tpu.memory_space<vmem>>, vector<8x128xbf16>
    %c0_1 = arith.constant 0 : index
    %c0_2 = arith.constant 0 : index
    %1 = vector.load %arg2[%c0_1, %c0_2] : memref<128x128xbf16, #tpu.memory_space<vmem>>, vector<128x128xbf16>
    %cst = arith.constant dense<0.000000e+00> : vector<8x128xf32>
    %2 = tpu.matmul %0, %1, %cst {dimension_numbers = #tpu.dot_dimension_numbers<[1], [0], [0], [1], [0, 0, 1, 1], [], []>} : vector<8x128xbf16>, vector<128x128xbf16>, vector<8x128xf32> -> vector<8x128xf32>
    %c0_3 = arith.constant 0 : index
    %c0_4 = arith.constant 0 : index
    %3 = vector.load %arg1[%c0_3, %c0_4] : memref<8x128xbf16, #tpu.memory_space<vmem>>, vector<8x128xbf16>
    %c0_5 = arith.constant 0 : index
    %c0_6 = arith.constant 0 : index
    %4 = vector.load %arg3[%c0_5, %c0_6] : memref<128x128xbf16, #tpu.memory_space<vmem>>, vector<128x128xbf16>
    %cst_7 = arith.constant dense<0.000000e+00> : vector<8x128xf32>
    %5 = tpu.matmul %3, %4, %cst_7 {dimension_numbers = #tpu.dot_dimension_numbers<[1], [0], [0], [1], [0, 0, 1, 1], [], []>} : vector<8x128xbf16>, vector<128x128xbf16>, vector<8x128xf32> -> vector<8x128xf32>
    %6 = arith.addf %2, %5 : vector<8x128xf32>
    %c0_8 = arith.constant 0 : index
    %c0_9 = arith.constant 0 : index
    %7 = vector.load %arg4[%c0_8, %c0_9] : memref<1x128xf32, #tpu.memory_space<vmem>>, vector<1x128xf32>
    %8 = vector.broadcast %7 : vector<1x128xf32> to vector<8x128xf32>
    %9 = arith.addf %6, %8 : vector<8x128xf32>
    %10 = math.tanh %9 : vector<8x128xf32>
    %c0_10 = arith.constant 0 : index
    %c0_11 = arith.constant 0 : index
    %11 = vector.load %arg5[%c0_10, %c0_11] : memref<8x128xf32, #tpu.memory_space<vmem>>, vector<8x128xf32>
    tpu.vector_store %arg5[%c0_10, %c0_11], %10 {strides = array<i32>} : memref<8x128xf32, #tpu.memory_space<vmem>>, vector<8x128xf32>,
    return
  }
}

</mosaic_0001>

<bundles_post_ra>
// kernel: tpu_custom_call.1
= control target key start
LH: loop header
LB: loop body
LE: loop exit
PB: predicated region body
PF: predicated region fallthrough
CT: control target
= control target key end

     0   :  { %10 = vsyncpa [#allocation3], 0  ;;  %s577_s0 = inlined_call_operand.hbm [shape: bf16[8,128], index: 0, kind: input, shape index: {}]   ;;  %s578_s1 = inlined_call_operand.hbm [shape: bf16[8,128], index: 1, kind: input, shape index: {}]   ;;  %s579_s2 = inlined_call_operand.hbm [shape: bf16[128,128], index: 2, kind: input, shape index: {}]   ;;  %s580_s3 = inlined_call_operand.hbm [shape: bf16[128,128], index: 3, kind: input, shape index: {}]   ;;  %s581_s4 = inlined_call_operand.vmem [shape: f32[1,128], index: 4, kind: input, shape index: {}]   ;;  %s582_s5 = inlined_call_operand.hbm [shape: f32[8,128], index: 5, kind: output, shape index: {}]  }
   0x1   :  { %11 = vsyncpa [#allocation6], 0 }
   0x2   :  { %12 = vsyncpa [#allocation9], 0 }
   0x3   :  { %13 = vsyncpa [#allocation4], 0  ;;  %s520_s18 = smov [#allocation5]   ;;  %s521_s20 = smov [#allocation2]  }
   0x4   :  { %s30_s19 = sshll.u32 %s520_s18, 4  ;;  %s20_s21 = sshll.u32 %s521_s20, 4  ;;  %s31_s19 = int_to_ptr.vmem [resolvable:$true] %s30_s19  ;;  %s21_s21 = int_to_ptr.vmem [resolvable:$true] %s20_s21 }
   0x5   :  { %s420_s22 = scalar_lea.vmem %s31_s19, 64  ;;  %p425_p1 = scmp.lt.s32.totalorder %s31_s19, %s31_s19 }
   0x6   :  { %p421_p0 = scmp.ne.s32.totalorder %s31_s19, %s420_s22  ;;  %p426_p2 = scmp.lt.s32.totalorder %s420_s22, %s420_s22 }
   0x8   :  { %p427_p3 = por %p426_p2, %p425_p1 }
   0xa   :  { %p428_p4 = pnand %p427_p3, %p421_p0 }
   0xc   :  { %431 = shalt.err (!%p428_p4)
}
   0xd   :  { %33 = dma.hbm_to_vmem [thread:$0]  %s578_s1, 64, %s31_s19, [#allocation6]  }
   0xe   :  { %s440_s25 = scalar_lea.vmem %s21_s21, 64  ;;  %p445_p6 = scmp.lt.s32.totalorder %s21_s21, %s21_s21 }
   0xf   :  { %p441_p5 = scmp.ne.s32.totalorder %s21_s21, %s440_s25  ;;  %p446_p7 = scmp.lt.s32.totalorder %s440_s25, %s440_s25 }
  0x11   :  { %p447_p8 = por %p446_p7, %p445_p6 }
  0x13   :  { %p448_p9 = pnand %p447_p8, %p441_p5 }
  0x15   :  { %451 = shalt.err (!%p448_p9)
}
  0x16   :  { %23 = dma.hbm_to_vmem [thread:$0]  %s577_s0, 64, %s21_s21, [#allocation3]  }
  0x17   :  { %s522_s28 = smov [#allocation7]  }
  0x18   :  { %s39_s29 = sshll.u32 %s522_s28, 4  ;;  %s40_s29 = int_to_ptr.vmem [resolvable:$true] %s39_s29 }
  0x19   :  { %s460_s30 = scalar_lea.vmem %s40_s29, 1024  ;;  %p465_p11 = scmp.lt.s32.totalorder %s40_s29, %s40_s29 }
  0x1a   :  { %p461_p10 = scmp.ne.s32.totalorder %s40_s29, %s460_s30  ;;  %p466_p12 = scmp.lt.s32.totalorder %s460_s30, %s460_s30 }
  0x1c   :  { %p467_p13 = por %p466_p12, %p465_p11 }
  0x1e   :  { %p468_p0 = pnand %p467_p13, %p461_p10 }
  0x20   :  { %471 = shalt.err (!%p468_p0)
}
  0x21   :  { %s523_s1 = smov 64   ;;  %s524_s6 = smov 4  }
  0x22   :  { %45 = dma.hbm_to_vmem [thread:$0]  %s579_s2, 1024, %s40_s29, [#allocation6], %s523_s1, %s523_s1, %s524_s6  }
  0x23   :  { %s525_s9 = smov [#allocation8]  }
  0x24   :  { %s51_s10 = sshll.u32 %s525_s9, 4  ;;  %s52_s10 = int_to_ptr.vmem [resolvable:$true] %s51_s10 }
  0x25   :  { %s480_s0 = scalar_lea.vmem %s52_s10, 1024  ;;  %p485_p2 = scmp.lt.s32.totalorder %s52_s10, %s52_s10 }
  0x26   :  { %p481_p1 = scmp.ne.s32.totalorder %s52_s10, %s480_s0  ;;  %p486_p3 = scmp.lt.s32.totalorder %s480_s0, %s480_s0 }
  0x28   :  { %p487_p4 = por %p486_p3, %p485_p2 }
  0x2a   :  { %p488_p5 = pnand %p487_p4, %p481_p1 }
  0x2c   :  { %491 = shalt.err (!%p488_p5)
}
  0x2d   :  { %57 = dma.hbm_to_vmem [thread:$0]  %s580_s3, 1024, %s52_s10, [#allocation9], %s523_s1, %s523_s1, %s524_s6  }
  0x2e   :  { %512 = dma.done.wait [#allocation3], 64  }
  0x2f   :  { %513 = vsyncadd [#allocation3], 4294967232 }
  0x30   :  { %514 = dma.done.wait [#allocation6], 1088  }
  0x31   :  { %515 = vsyncadd [#allocation6], 4294966208 }
  0x32   :  { %516 = dma.done.wait [#allocation9], 1024  }
  0x33   :  { %517 = vsyncadd [#allocation9], 4294966272  ;;  %v526_v0 = vmov 0.0   ;;  %vm527_vm0 = vmmov 0   ;;  %v394_v1 = vld [vmem:[#allocation8 + $0x38] sm:$0xff]   ;;  %v396_v3 = vld [vmem:[#allocation8 + $0x30] sm:$0xff]  }
  0x34   :  { %345 = vmatprep.subr.bf16.mxu0 %v526_v0  ;;  %365 = vmatprep.subr.bf16.mxu1 %v526_v0  ;;  %v395_v2 = vld [vmem:[#allocation7 + $0x38] sm:$0xff]   ;;  %v397_v4 = vld [vmem:[#allocation7 + $0x30] sm:$0xff]   ;;  %v398_v5 = vld [vmem:[#allocation8 + $0x28] sm:$0xff]   ;;  %s528_s13 = smov [#allocation10]  }
  0x35   :  { %361 = vmatprep.mubr.msk.bf16.mxu0 %vm527_vm0, %v526_v0  ;;  %381 = vmatprep.mubr.msk.bf16.mxu1 %vm527_vm0, %v526_v0  ;;  %v399_v6 = vld [vmem:[#allocation7 + $0x28] sm:$0xff]   ;;  %v400_v7 = vld [vmem:[#allocation8 + $0x20] sm:$0xff]   ;;  %v402_v9 = vld [vmem:[#allocation8 + $0x18] sm:$0xff]   ;;  %s299_s14 = sshll.u32 %s528_s13, 4  ;;  %s300_s14 = int_to_ptr.vmem [resolvable:$true] %s299_s14 }
  0x36   :  { %346 = vmatpush3.bf16.msra.mxu0 %v394_v1  ;;  %366 = vmatpush3.bf16.msra.mxu1 %v395_v2  ;;  %v401_v8 = vld [vmem:[#allocation7 + $0x20] sm:$0xff]   ;;  %v403_v10 = vld [vmem:[#allocation7 + $0x18] sm:$0xff]   ;;  %v404_v11 = vld [vmem:[#allocation8 + $0x10] sm:$0xff]   ;;  %s492_s15 = scalar_lea.vmem %s300_s14, 128  ;;  %p497_p7 = scmp.lt.s32.totalorder %s300_s14, %s300_s14 }
  0x37   :  { %347 = vmatprep.subr.bf16.mxu0 %v526_v0  ;;  %367 = vmatprep.subr.bf16.mxu1 %v526_v0  ;;  %v405_v12 = vld [vmem:[#allocation7 + $0x10] sm:$0xff]   ;;  %v406_v13 = vld [vmem:[#allocation8 + $0x8] sm:$0xff]   ;;  %v408_v15 = vld [vmem:[#allocation8] sm:$0xff]   ;;  %p493_p6 = scmp.ne.s32.totalorder %s300_s14, %s492_s15  ;;  %p498_p8 = scmp.lt.s32.totalorder %s492_s15, %s492_s15 }
  0x38   :  { %v407_v14 = vld [vmem:[#allocation7 + $0x8] sm:$0xff]   ;;  %v409_v16 = vld [vmem:[#allocation7] sm:$0xff]   ;;  %v90_v17 = vld [vmem:[#allocation5] sm:$0xf] }
  0x39   :  { %v73_v18 = vld [vmem:[#allocation2] sm:$0xf]  ;;  %p499_p9 = por %p498_p8, %p497_p7 }
  0x3a   :  { %348 = vmatpush3.bf16.msra.mxu0 %v396_v3  ;;  %368 = vmatpush3.bf16.msra.mxu1 %v397_v4  ;;  %v326_v21 = vld [vmem:[%s581_s4] ss:$0 sm:$0xff] }
  0x3b   :  { %349 = vmatprep.subr.bf16.mxu0 %v526_v0  ;;  %369 = vmatprep.subr.bf16.mxu1 %v526_v0  ;;  %p500_p10 = pnand %p499_p9, %p493_p6 }
  0x3e   :  { %350 = vmatpush3.bf16.msra.mxu0 %v398_v5  ;;  %370 = vmatpush3.bf16.msra.mxu1 %v399_v6 }
  0x3f   :  { %351 = vmatprep.subr.bf16.mxu0 %v526_v0  ;;  %371 = vmatprep.subr.bf16.mxu1 %v526_v0 }
  0x42   :  { %352 = vmatpush3.bf16.msra.mxu0 %v400_v7  ;;  %372 = vmatpush3.bf16.msra.mxu1 %v401_v8 }
  0x43   :  { %353 = vmatprep.subr.bf16.mxu0 %v526_v0  ;;  %373 = vmatprep.subr.bf16.mxu1 %v526_v0 }
  0x46   :  { %354 = vmatpush3.bf16.msra.mxu0 %v402_v9  ;;  %374 = vmatpush3.bf16.msra.mxu1 %v403_v10 }
  0x47   :  { %355 = vmatprep.subr.bf16.mxu0 %v526_v0  ;;  %375 = vmatprep.subr.bf16.mxu1 %v526_v0 }
  0x4a   :  { %356 = vmatpush3.bf16.msra.mxu0 %v404_v11  ;;  %376 = vmatpush3.bf16.msra.mxu1 %v405_v12 }
  0x4b   :  { %357 = vmatprep.subr.bf16.mxu0 %v526_v0  ;;  %377 = vmatprep.subr.bf16.mxu1 %v526_v0 }
  0x4e   :  { %358 = vmatpush3.bf16.msra.mxu0 %v406_v13  ;;  %378 = vmatpush3.bf16.msra.mxu1 %v407_v14 }
  0x4f   :  { %359 = vmatprep.subr.bf16.mxu0 %v526_v0  ;;  %379 = vmatprep.subr.bf16.mxu1 %v526_v0 }
  0x52   :  { %360 = vmatpush3.bf16.msra.mxu0 %v408_v15  ;;  %380 = vmatpush3.bf16.msra.mxu1 %v409_v16 }
  0x55   :  { %362 = vmatmul.mubr.bf16.vlgmr.msra.gmra.mxu0 %v90_v17  ;;  %382 = vmatmul.mubr.bf16.vlgmr.msra.gmra.mxu1 %v73_v18 }
 0x115   :  { %v189_v19 = vpop.f32.mrf.mxu0  ;;  %v277_v20 = vpop.f32.mrf.mxu1 }
 0x116   :  { %v278_v22 = vadd.f32 %v277_v20, %v189_v19 }
 0x117   :  { %v363_v23 = vpop.f32.mrf.mxu0  ;;  %v383_v24 = vpop.f32.mrf.mxu1 }
 0x118   :  { %v290_v25 = vadd.f32 %v326_v21, %v278_v22 }
 0x119   :  { %v192_v26 = vpop.f32.mrf.mxu0  ;;  %v280_v27 = vpop.f32.mrf.mxu1 }
 0x11a   :  { %410 = vtanh.f32 %v290_v25 }
 0x11b   :  { %v364_v28 = vpop.f32.mrf.mxu0  ;;  %v384_v29 = vpop.f32.mrf.mxu1 }
 0x127   :  { %v411_v30 = vpop.eup %410 }
 0x128   :  { %292 = vst [vmem:[#allocation10] sm:$0xff] %v411_v30 }
 0x129   :  { %503 = shalt.err (!%p500_p10)
}
 0x12a   :  { %302 = dma.vmem_to_hbm [thread:$0]  %s300_s14, 128, %s582_s5, [#allocation4]  }
 0x12b   :  { %518 = dma.done.wait [#allocation4], 128  }
 0x12c   :  { %519 = vsyncadd [#allocation4], 4294967168 }
 0x12d   :  { %306 = vsyncpa [#allocation3], 1 }
 0x12e   :  { %307 = vsyncpa [#allocation6], 1 }
 0x12f   :  { %308 = vsyncpa [#allocation9], 1 }
 0x130   :  { %309 = vsyncpa [#allocation4], 1 }

</bundles_post_ra>
